<compile_context>
chip_gen: v6e
topology: v6e:2x2x1
jax: 0.10.0
libtpu: 0.0.40
codegen_flags: <defaults>
</compile_context>

<pallas_src>
import functools
from typing import NamedTuple

import jax
import jax.numpy as jnp
from jax import lax
from jax.experimental import pallas as pl
from jax.experimental.pallas import tpu as pltpu

_MIB = 1024 * 1024
_VMEM_HEADROOM = 8 * _MIB
_SINGLE_BUFFER_OK = True  # flipped off if pl.Buffered(1) is rejected by this JAX build


def _round_up(v, m):
    return ((v + m - 1) // m) * m


# ---------------------------------------------------------------------------
# Hardware introspection (generation-aware VMEM budget / tiling).
# ---------------------------------------------------------------------------
def _tpu_hw():
    kind = ""
    try:
        kind = jax.devices()[0].device_kind.lower()
    except Exception:
        pass
    vmem_cap = None
    try:
        vmem_cap = int(pltpu.get_tpu_info().vmem_capacity_bytes)
    except Exception:
        vmem_cap = None
    is_v7x = "v7" in kind
    if vmem_cap is None:
        vmem_cap = (64 if is_v7x else 128) * _MIB
    is_v7x = is_v7x or vmem_cap <= 64 * _MIB
    is_v5e = ("v5 lite" in kind) or ("v5e" in kind) or ("v5litepod" in kind)
    return vmem_cap, is_v7x, is_v5e


# ---------------------------------------------------------------------------
# GELU
# ---------------------------------------------------------------------------
_SQRT_HALF = 0.7071067811865476
_SQRT_2_OVER_PI = 0.7978845608028654


def _gelu(x, approx):
    if approx:
        # tanh approximation: uses the EUP slot instead of the long f32 erf VALU polynomial.
        return 0.5 * x * (1.0 + jnp.tanh(_SQRT_2_OVER_PI * (x + 0.044715 * x * x * x)))
    # PyTorch nn.GELU() default: exact erf-based GELU (computed in f32).
    return 0.5 * x * (1.0 + lax.erf(x * _SQRT_HALF))


# ---------------------------------------------------------------------------
# Kernel
# ---------------------------------------------------------------------------
def mlp_kernel(x_ref, w1_ref, b1_ref, w2_ref, b2_ref, w3_ref, b3_ref, o_ref,
               *, n_chunks, gelu_approx):
    # Weights/biases are VMEM-resident (constant index_map, single-buffered); read once.
    w1 = w1_ref[...]
    w2 = w2_ref[...]
    w3 = w3_ref[...]
    b1 = b1_ref[...]          # (1, H_p)   f32
    b2 = b2_ref[...]          # (1, H_p)   f32
    b3 = b3_ref[...]          # (1, nout_p) f32

    tile_b = x_ref.shape[0]
    chunk = tile_b // n_chunks
    # Static unroll over sub-chunks: chunk k+1's MXU matmuls can overlap chunk k's
    # GELU VALU/EUP work (otherwise the dot->gelu->dot chain strictly serializes).
    for c in range(n_chunks):
        lo, hi = c * chunk, (c + 1) * chunk
        x = x_ref[lo:hi, :]
        h1 = jnp.dot(x, w1, preferred_element_type=jnp.float32) + b1
        h1 = _gelu(h1, gelu_approx).astype(w2.dtype)
        h2 = jnp.dot(h1, w2, preferred_element_type=jnp.float32) + b2
        h2 = _gelu(h2, gelu_approx).astype(w3.dtype)
        y = jnp.dot(h2, w3, preferred_element_type=jnp.float32) + b3
        o_ref[lo:hi, :] = y.astype(o_ref.dtype)


# ---------------------------------------------------------------------------
# One-time parameter preparation (padding hoisted out of the forward path)
# ---------------------------------------------------------------------------
class PreparedMLP(NamedTuple):
    w1p: jax.Array
    b1p: jax.Array
    w2p: jax.Array
    b2p: jax.Array
    w3p: jax.Array
    b3p: jax.Array
    nin: int
    hidden: int
    nout: int


def prepare_params(params, compute_dtype=jnp.bfloat16):
    """Lane-dense padding + cast of the weights/biases, done ONCE.

    Zero padding is exact: padded weight rows/cols and biases are 0 and GELU(0)=0,
    and padded output columns are sliced off in the forward.
    """
    w1, b1, w2, b2, w3, b3 = params
    nin, H = w1.shape
    nout = w3.shape[1]
    nin_p, H_p, nout_p = _round_up(nin, 128), _round_up(H, 128), _round_up(nout, 128)
    cdt = jnp.dtype(compute_dtype)

    def pad2d(a, rp, cp, dt):
        a = a.astype(dt)
        if a.shape == (rp, cp):
            return a                       # skip the copy when already aligned
        return jnp.zeros((rp, cp), dt).at[: a.shape[0], : a.shape[1]].set(a)

    w1p = pad2d(w1, nin_p, H_p, cdt)
    w2p = pad2d(w2, H_p, H_p, cdt)
    w3p = pad2d(w3, H_p, nout_p, cdt)
    b1p = pad2d(b1.reshape(1, -1), 1, H_p, jnp.float32)
    b2p = pad2d(b2.reshape(1, -1), 1, H_p, jnp.float32)
    b3p = pad2d(b3.reshape(1, -1), 1, nout_p, jnp.float32)
    return PreparedMLP(w1p, b1p, w2p, b2p, w3p, b3p, nin, H, nout)


# ---------------------------------------------------------------------------
# Forward
# ---------------------------------------------------------------------------
class _KernelCfg(NamedTuple):
    tile_b: int
    n_chunks: int
    vmem_limit: int
    single_buffer_weights: bool
    gelu_approx: bool
    fallback: bool


def _vmem_estimate(tile, nin_p, H_p, nout_p, cdt_size, out_size, n_chunks, single_buf):
    wmul = 1 if single_buf else 2
    w = wmul * ((nin_p * H_p + H_p * H_p + H_p * nout_p) * cdt_size
                + (2 * H_p + nout_p) * 4)
    io = 2 * tile * (nin_p * cdt_size + nout_p * out_size)      # double-buffered x / out tiles
    chunk = max(tile // n_chunks, 1)
    tmp = 2 * chunk * (2 * H_p + nout_p) * 4                    # f32 h1/h2/y working set + headroom
    return w + io + tmp


@functools.partial(jax.jit, static_argnames=("nin", "nout", "cfg"))
def _mlp_forward_impl(x, w1p, b1p, w2p, b2p, w3p, b3p, *, nin, nout, cfg):
    B = x.shape[0]
    nin_p, H_p = w1p.shape
    nout_p = w3p.shape[1]
    cdt = w1p.dtype

    if cfg.fallback:
        # TODO(synk): stream W2/W3 N-tiles through an extra "arbitrary" grid axis when the
        # three weight matrices don't fit in VMEM together, instead of this XLA fallback.
        xf = x.astype(jnp.float32)
        h = _gelu(xf @ w1p[:nin].astype(jnp.float32) + b1p, cfg.gelu_approx)
        h = _gelu(h @ w2p.astype(jnp.float32) + b2p, cfg.gelu_approx)
        y = h @ w3p.astype(jnp.float32) + b3p
        return y[:, :nout].astype(x.dtype)

    tile = cfg.tile_b
    B_p = _round_up(B, tile)

    if (B_p, nin_p) == (B, nin) and x.dtype == cdt:
        xp = x                             # skip the padding copy when already lane-dense
    else:
        xp = jnp.zeros((B_p, nin_p), cdt).at[:B, :nin].set(x.astype(cdt))

    grid = (B_p // tile,)
    resident_mode = pl.Buffered(1) if cfg.single_buffer_weights else None

    def resident(shape):
        # constant index_map -> weight stays put in VMEM; single-buffer it.
        return pl.BlockSpec(shape, lambda i: (0, 0), pipeline_mode=resident_mode)

    in_specs = [
        pl.BlockSpec((tile, nin_p), lambda i: (i, 0)),   # x: tiled over batch
        resident((nin_p, H_p)),                          # w1
        resident((1, H_p)),                              # b1
        resident((H_p, H_p)),                            # w2
        resident((1, H_p)),                              # b2
        resident((H_p, nout_p)),                         # w3
        resident((1, nout_p)),                           # b3
    ]

    out_itemsize = jnp.dtype(x.dtype).itemsize
    w_bytes = ((nin_p * H_p + H_p * H_p + H_p * nout_p) * cdt.itemsize
               + (2 * H_p + nout_p) * 4)
    flops = 2 * B_p * (nin_p * H_p + H_p * H_p + H_p * nout_p)
    transcendentals = 2 * B_p * H_p
    bytes_accessed = (B_p * nin_p * cdt.itemsize + w_bytes + B_p * nout_p * out_itemsize)

    kernel = functools.partial(mlp_kernel, n_chunks=cfg.n_chunks,
                               gelu_approx=cfg.gelu_approx)

    out = pl.pallas_call(
        kernel,
        out_shape=jax.ShapeDtypeStruct((B_p, nout_p), x.dtype),
        grid_spec=pltpu.PrefetchScalarGridSpec(
            num_scalar_prefetch=0,
            grid=grid,
            in_specs=in_specs,
            out_specs=pl.BlockSpec((tile, nout_p), lambda i: (i, 0)),
        ),
        compiler_params=pltpu.CompilerParams(
            dimension_semantics=("parallel",),
            vmem_limit_bytes=cfg.vmem_limit,
        ),
        cost_estimate=pl.CostEstimate(
            flops=flops,
            transcendentals=transcendentals,
            bytes_accessed=bytes_accessed,
        ),
    )(xp, w1p, b1p, w2p, b2p, w3p, b3p)

    return out[:B, :nout]


def mlp_forward(x, prepared, *, tile_b=None, gelu_approx=False):
    """Fused 3-layer MLP forward. x: (B, nin) -> (B, nout) in x.dtype."""
    global _SINGLE_BUFFER_OK
    nin, nout = prepared.nin, prepared.nout
    nin_p, H_p = prepared.w1p.shape
    nout_p = prepared.w3p.shape[1]
    cdt = jnp.dtype(prepared.w1p.dtype)
    out_size = jnp.dtype(x.dtype).itemsize
    B = x.shape[0]

    vmem_cap, is_v7x, is_v5e = _tpu_hw()
    budget = vmem_cap - _VMEM_HEADROOM

    # --- batch tile (generation-aware) ---
    align = 16 if cdt.itemsize == 2 else 8              # bf16 sublane packing wants x16
    m_align = 128 if is_v5e else 256                    # MXU M tile: 128 (v5e) / 256 (v6e, v7x)
    B_al = _round_up(B, align)

    if tile_b is None:
        tile = (256 if H_p >= 4096 else 512) if is_v7x else 1024
    else:
        tile = tile_b
    if B_al >= m_align:
        tile = _round_up(min(tile, _round_up(B_al, m_align)), m_align)
        if is_v7x and B_al >= 2 * m_align:
            # keep >= 2 grid steps so both v7x TensorCores get work
            tile = min(tile, _round_up(-(-B_al // 2), m_align))
    else:
        tile = _round_up(B_al, align)

    # Resident weights (single-buffered) must fit; otherwise fall back.
    w_bytes = ((nin_p * H_p + H_p * H_p + H_p * nout_p) * cdt.itemsize
               + (2 * H_p + nout_p) * 4)
    fallback = w_bytes > budget

    single_buf = _SINGLE_BUFFER_OK
    n_chunks = 1
    if not fallback:
        # Shrink the batch tile until the working set fits the VMEM budget.
        while tile > align and _vmem_estimate(tile, nin_p, H_p, nout_p, cdt.itemsize,
                                              out_size, n_chunks, single_buf) > budget:
            tile = max(align, _round_up(tile // 2, align))
        n_chunks = 2 if (tile >= 512 and tile % 16 == 0) else 1

    est = _vmem_estimate(tile, nin_p, H_p, nout_p, cdt.itemsize, out_size,
                         n_chunks, single_buf)
    vmem_limit = int(min(max(est + est // 4, 32 * _MIB), vmem_cap - 4 * _MIB))

    def make_cfg(sb):
        return _KernelCfg(tile_b=int(tile), n_chunks=int(n_chunks),
                          vmem_limit=int(vmem_limit), single_buffer_weights=bool(sb),
                          gelu_approx=bool(gelu_approx), fallback=bool(fallback))

    args = (x, prepared.w1p, prepared.b1p, prepared.w2p, prepared.b2p,
            prepared.w3p, prepared.b3p)
    try:
        return _mlp_forward_impl(*args, nin=nin, nout=nout, cfg=make_cfg(single_buf))
    except Exception:
        if not single_buf:
            raise
        # Safety net: this JAX build rejected Buffered(1); retry double-buffered.
        _SINGLE_BUFFER_OK = False
        return _mlp_forward_impl(*args, nin=nin, nout=nout, cfg=make_cfg(False))


# ---------------------------------------------------------------------------
# Init / reference
# ---------------------------------------------------------------------------
def init_params(key, nin, nout, hidden_dim, dtype=jnp.float32):
    """Deterministic init mimicking nn.Linear default (uniform +-1/sqrt(fan_in))."""
    ks = jax.random.split(key, 6)

    def linear(kw, kb, fan_in, fan_out):
        bound = 1.0 / jnp.sqrt(jnp.float32(fan_in))
        w = jax.random.uniform(kw, (fan_in, fan_out), dtype, -bound, bound)
        b = jax.random.uniform(kb, (1, fan_out), dtype, -bound, bound)
        return w, b

    w1, b1 = linear(ks[0], ks[1], nin, hidden_dim)
    w2, b2 = linear(ks[2], ks[3], hidden_dim, hidden_dim)
    w3, b3 = linear(ks[4], ks[5], hidden_dim, nout)
    return (w1, b1, w2, b2, w3, b3)


def mlp_reference(x, params):
    w1, b1, w2, b2, w3, b3 = params
    h = jax.nn.gelu(x @ w1 + b1, approximate=False)
    h = jax.nn.gelu(h @ w2 + b2, approximate=False)
    return h @ w3 + b3


if __name__ == "__main__":
    key = jax.random.PRNGKey(0)
    k_x, k_p, k_x2 = jax.random.split(key, 3)

    # Small shapes consistent with the module.
    batch, nin, nout, hidden_dim = 8, 4, 3, 32
    x = jax.random.normal(k_x, (batch, nin), jnp.float32)
    params = init_params(k_p, nin, nout, hidden_dim)
    ref = mlp_reference(x, params)

    # f32 compute path: padding/grid/chunking logic must be numerically exact vs reference.
    prep_f32 = prepare_params(params, compute_dtype=jnp.float32)
    out_f32 = jax.block_until_ready(mlp_forward(x, prep_f32))
    assert out_f32.shape == (batch, nout)
    assert jnp.allclose(out_f32, ref, atol=1e-5, rtol=1e-5)

    # Default bf16-MXU / f32-accumulate path (padding hoisted via prepare_params).
    prep_bf16 = prepare_params(params, compute_dtype=jnp.bfloat16)
    out_bf16 = jax.block_until_ready(mlp_forward(x, prep_bf16))
    assert out_bf16.shape == (batch, nout)
    assert jnp.allclose(out_bf16, ref, atol=3e-2, rtol=3e-2)

    # Larger (still small) batch to exercise batch tiling / padded grid.
    x2 = jax.random.normal(k_x2, (300, nin), jnp.float32)
    ref2 = mlp_reference(x2, params)
    out2 = jax.block_until_ready(mlp_forward(x2, prep_f32))
    assert out2.shape == (300, nout)
    assert jnp.allclose(out2, ref2, atol=1e-5, rtol=1e-5)

    print("KERNEL_OK")
</pallas_src>

<mosaic_0001>
module attributes {stable_mosaic.version = 11 : i64} {
  func.func @mlp_kernel(%arg0: i32, %arg1: memref<8x128xf32, #tpu.memory_space<vmem>>, %arg2: memref<128x128xf32, #tpu.memory_space<vmem>>, %arg3: memref<1x128xf32, #tpu.memory_space<vmem>>, %arg4: memref<128x128xf32, #tpu.memory_space<vmem>>, %arg5: memref<1x128xf32, #tpu.memory_space<vmem>>, %arg6: memref<128x128xf32, #tpu.memory_space<vmem>>, %arg7: memref<1x128xf32, #tpu.memory_space<vmem>>, %arg8: memref<8x128xf32, #tpu.memory_space<vmem>>) attributes {dimension_semantics = [#tpu.dimension_semantics<parallel>], iteration_bounds = array<i64: 1>, scalar_prefetch = 0 : i64, scratch_operands = 0 : i64, tpu.core_type = #tpu.core_type<tc>, window_params = [{transform_indices = @transform_0, window_bounds = array<i64: 8, 128>}, {pipeline_mode = #tpu.pipeline_mode<synchronous>, transform_indices = @transform_1, window_bounds = array<i64: 128, 128>}, {pipeline_mode = #tpu.pipeline_mode<synchronous>, transform_indices = @transform_2, window_bounds = array<i64: 1, 128>}, {pipeline_mode = #tpu.pipeline_mode<synchronous>, transform_indices = @transform_3, window_bounds = array<i64: 128, 128>}, {pipeline_mode = #tpu.pipeline_mode<synchronous>, transform_indices = @transform_4, window_bounds = array<i64: 1, 128>}, {pipeline_mode = #tpu.pipeline_mode<synchronous>, transform_indices = @transform_5, window_bounds = array<i64: 128, 128>}, {pipeline_mode = #tpu.pipeline_mode<synchronous>, transform_indices = @transform_6, window_bounds = array<i64: 1, 128>}, {transform_indices = @transform_7, window_bounds = array<i64: 8, 128>}]} {
    %c0 = arith.constant 0 : index
    %c0_0 = arith.constant 0 : index
    %0 = vector.load %arg2[%c0, %c0_0] : memref<128x128xf32, #tpu.memory_space<vmem>>, vector<128x128xf32>
    %c0_1 = arith.constant 0 : index
    %c0_2 = arith.constant 0 : index
    %1 = vector.load %arg4[%c0_1, %c0_2] : memref<128x128xf32, #tpu.memory_space<vmem>>, vector<128x128xf32>
    %c0_3 = arith.constant 0 : index
    %c0_4 = arith.constant 0 : index
    %2 = vector.load %arg6[%c0_3, %c0_4] : memref<128x128xf32, #tpu.memory_space<vmem>>, vector<128x128xf32>
    %c0_5 = arith.constant 0 : index
    %c0_6 = arith.constant 0 : index
    %3 = vector.load %arg3[%c0_5, %c0_6] : memref<1x128xf32, #tpu.memory_space<vmem>>, vector<1x128xf32>
    %c0_7 = arith.constant 0 : index
    %c0_8 = arith.constant 0 : index
    %4 = vector.load %arg5[%c0_7, %c0_8] : memref<1x128xf32, #tpu.memory_space<vmem>>, vector<1x128xf32>
    %c0_9 = arith.constant 0 : index
    %c0_10 = arith.constant 0 : index
    %5 = vector.load %arg7[%c0_9, %c0_10] : memref<1x128xf32, #tpu.memory_space<vmem>>, vector<1x128xf32>
    %c0_11 = arith.constant 0 : index
    %c0_12 = arith.constant 0 : index
    %6 = vector.load %arg1[%c0_11, %c0_12] : memref<8x128xf32, #tpu.memory_space<vmem>>, vector<8x128xf32>
    %cst = arith.constant dense<0.000000e+00> : vector<8x128xf32>
    %7 = tpu.matmul %6, %0, %cst {dimension_numbers = #tpu.dot_dimension_numbers<[1], [0], [0], [1], [0, 0, 1, 1], [], []>} : vector<8x128xf32>, vector<128x128xf32>, vector<8x128xf32> -> vector<8x128xf32>
    %8 = vector.broadcast %3 : vector<1x128xf32> to vector<8x128xf32>
    %9 = arith.addf %7, %8 : vector<8x128xf32>
    %cst_13 = arith.constant 5.000000e-01 : f32
    %10 = vector.broadcast %cst_13 : f32 to vector<8x128xf32>
    %11 = arith.mulf %10, %9 : vector<8x128xf32>
    %cst_14 = arith.constant 0.707106769 : f32
    %12 = vector.broadcast %cst_14 : f32 to vector<8x128xf32>
    %13 = arith.mulf %9, %12 : vector<8x128xf32>
    %14 = math.erf %13 : vector<8x128xf32>
    %cst_15 = arith.constant 1.000000e+00 : f32
    %15 = vector.broadcast %cst_15 : f32 to vector<8x128xf32>
    %16 = arith.addf %15, %14 : vector<8x128xf32>
    %17 = arith.mulf %11, %16 : vector<8x128xf32>
    %cst_16 = arith.constant dense<0.000000e+00> : vector<8x128xf32>
    %18 = tpu.matmul %17, %1, %cst_16 {dimension_numbers = #tpu.dot_dimension_numbers<[1], [0], [0], [1], [0, 0, 1, 1], [], []>} : vector<8x128xf32>, vector<128x128xf32>, vector<8x128xf32> -> vector<8x128xf32>
    %19 = vector.broadcast %4 : vector<1x128xf32> to vector<8x128xf32>
    %20 = arith.addf %18, %19 : vector<8x128xf32>
    %cst_17 = arith.constant 5.000000e-01 : f32
    %21 = vector.broadcast %cst_17 : f32 to vector<8x128xf32>
    %22 = arith.mulf %21, %20 : vector<8x128xf32>
    %cst_18 = arith.constant 0.707106769 : f32
    %23 = vector.broadcast %cst_18 : f32 to vector<8x128xf32>
    %24 = arith.mulf %20, %23 : vector<8x128xf32>
    %25 = math.erf %24 : vector<8x128xf32>
    %cst_19 = arith.constant 1.000000e+00 : f32
    %26 = vector.broadcast %cst_19 : f32 to vector<8x128xf32>
    %27 = arith.addf %26, %25 : vector<8x128xf32>
    %28 = arith.mulf %22, %27 : vector<8x128xf32>
    %cst_20 = arith.constant dense<0.000000e+00> : vector<8x128xf32>
    %29 = tpu.matmul %28, %2, %cst_20 {dimension_numbers = #tpu.dot_dimension_numbers<[1], [0], [0], [1], [0, 0, 1, 1], [], []>} : vector<8x128xf32>, vector<128x128xf32>, vector<8x128xf32> -> vector<8x128xf32>
    %30 = vector.broadcast %5 : vector<1x128xf32> to vector<8x128xf32>
    %31 = arith.addf %29, %30 : vector<8x128xf32>
    %c0_21 = arith.constant 0 : index
    %c0_22 = arith.constant 0 : index
    %32 = vector.load %arg8[%c0_21, %c0_22] : memref<8x128xf32, #tpu.memory_space<vmem>>, vector<8x128xf32>
    tpu.vector_store %arg8[%c0_21, %c0_22], %31 {strides = array<i32>} : memref<8x128xf32, #tpu.memory_space<vmem>>, vector<8x128xf32>,
    return
  }
  func.func @transform_0(%arg0: i32) -> (i32, i32) {
    %c0_i32 = arith.constant 0 : i32
    %c0_i32_0 = arith.constant 0 : i32
    return %arg0, %c0_i32 : i32, i32
  }
  func.func @transform_1(%arg0: i32) -> (i32, i32) {
    %c0_i32 = arith.constant 0 : i32
    %c0_i32_0 = arith.constant 0 : i32
    %c0_i32_1 = arith.constant 0 : i32
    return %c0_i32, %c0_i32_0 : i32, i32
  }
  func.func @transform_2(%arg0: i32) -> (i32, i32) {
    %c0_i32 = arith.constant 0 : i32
    %c0_i32_0 = arith.constant 0 : i32
    %c0_i32_1 = arith.constant 0 : i32
    return %c0_i32, %c0_i32_0 : i32, i32
  }
  func.func @transform_3(%arg0: i32) -> (i32, i32) {
    %c0_i32 = arith.constant 0 : i32
    %c0_i32_0 = arith.constant 0 : i32
    %c0_i32_1 = arith.constant 0 : i32
    return %c0_i32, %c0_i32_0 : i32, i32
  }
  func.func @transform_4(%arg0: i32) -> (i32, i32) {
    %c0_i32 = arith.constant 0 : i32
    %c0_i32_0 = arith.constant 0 : i32
    %c0_i32_1 = arith.constant 0 : i32
    return %c0_i32, %c0_i32_0 : i32, i32
  }
  func.func @transform_5(%arg0: i32) -> (i32, i32) {
    %c0_i32 = arith.constant 0 : i32
    %c0_i32_0 = arith.constant 0 : i32
    %c0_i32_1 = arith.constant 0 : i32
    return %c0_i32, %c0_i32_0 : i32, i32
  }
  func.func @transform_6(%arg0: i32) -> (i32, i32) {
    %c0_i32 = arith.constant 0 : i32
    %c0_i32_0 = arith.constant 0 : i32
    %c0_i32_1 = arith.constant 0 : i32
    return %c0_i32, %c0_i32_0 : i32, i32
  }
  func.func @transform_7(%arg0: i32) -> (i32, i32) {
    %c0_i32 = arith.constant 0 : i32
    %c0_i32_0 = arith.constant 0 : i32
    return %arg0, %c0_i32 : i32, i32
  }
}

module attributes {stable_mosaic.version = 11 : i64} {
  func.func @mlp_kernel(%arg0: i32, %arg1: memref<8x128xf32, #tpu.memory_space<vmem>>, %arg2: memref<128x128xf32, #tpu.memory_space<vmem>>, %arg3: memref<1x128xf32, #tpu.memory_space<vmem>>, %arg4: memref<128x128xf32, #tpu.memory_space<vmem>>, %arg5: memref<1x128xf32, #tpu.memory_space<vmem>>, %arg6: memref<128x128xf32, #tpu.memory_space<vmem>>, %arg7: memref<1x128xf32, #tpu.memory_space<vmem>>, %arg8: memref<8x128xf32, #tpu.memory_space<vmem>>) attributes {dimension_semantics = [#tpu.dimension_semantics<parallel>], iteration_bounds = array<i64: 1>, scalar_prefetch = 0 : i64, scratch_operands = 0 : i64, tpu.core_type = #tpu.core_type<tc>, window_params = [{transform_indices = @transform_0, window_bounds = array<i64: 8, 128>}, {pipeline_mode = #tpu.pipeline_mode<synchronous>, transform_indices = @transform_1, window_bounds = array<i64: 128, 128>}, {pipeline_mode = #tpu.pipeline_mode<synchronous>, transform_indices = @transform_2, window_bounds = array<i64: 1, 128>}, {pipeline_mode = #tpu.pipeline_mode<synchronous>, transform_indices = @transform_3, window_bounds = array<i64: 128, 128>}, {pipeline_mode = #tpu.pipeline_mode<synchronous>, transform_indices = @transform_4, window_bounds = array<i64: 1, 128>}, {pipeline_mode = #tpu.pipeline_mode<synchronous>, transform_indices = @transform_5, window_bounds = array<i64: 128, 128>}, {pipeline_mode = #tpu.pipeline_mode<synchronous>, transform_indices = @transform_6, window_bounds = array<i64: 1, 128>}, {transform_indices = @transform_7, window_bounds = array<i64: 8, 128>}]} {
    %c0 = arith.constant 0 : index
    %c0_0 = arith.constant 0 : index
    %0 = vector.load %arg2[%c0, %c0_0] : memref<128x128xf32, #tpu.memory_space<vmem>>, vector<128x128xf32>
    %c0_1 = arith.constant 0 : index
    %c0_2 = arith.constant 0 : index
    %1 = vector.load %arg4[%c0_1, %c0_2] : memref<128x128xf32, #tpu.memory_space<vmem>>, vector<128x128xf32>
    %c0_3 = arith.constant 0 : index
    %c0_4 = arith.constant 0 : index
    %2 = vector.load %arg6[%c0_3, %c0_4] : memref<128x128xf32, #tpu.memory_space<vmem>>, vector<128x128xf32>
    %c0_5 = arith.constant 0 : index
    %c0_6 = arith.constant 0 : index
    %3 = vector.load %arg3[%c0_5, %c0_6] : memref<1x128xf32, #tpu.memory_space<vmem>>, vector<1x128xf32>
    %c0_7 = arith.constant 0 : index
    %c0_8 = arith.constant 0 : index
    %4 = vector.load %arg5[%c0_7, %c0_8] : memref<1x128xf32, #tpu.memory_space<vmem>>, vector<1x128xf32>
    %c0_9 = arith.constant 0 : index
    %c0_10 = arith.constant 0 : index
    %5 = vector.load %arg7[%c0_9, %c0_10] : memref<1x128xf32, #tpu.memory_space<vmem>>, vector<1x128xf32>
    %c0_11 = arith.constant 0 : index
    %c0_12 = arith.constant 0 : index
    %6 = vector.load %arg1[%c0_11, %c0_12] : memref<8x128xf32, #tpu.memory_space<vmem>>, vector<8x128xf32>
    %cst = arith.constant dense<0.000000e+00> : vector<8x128xf32>
    %7 = tpu.matmul %6, %0, %cst {dimension_numbers = #tpu.dot_dimension_numbers<[1], [0], [0], [1], [0, 0, 1, 1], [], []>} : vector<8x128xf32>, vector<128x128xf32>, vector<8x128xf32> -> vector<8x128xf32>
    %8 = vector.broadcast %3 : vector<1x128xf32> to vector<8x128xf32>
    %9 = arith.addf %7, %8 : vector<8x128xf32>
    %cst_13 = arith.constant 5.000000e-01 : f32
    %10 = vector.broadcast %cst_13 : f32 to vector<8x128xf32>
    %11 = arith.mulf %10, %9 : vector<8x128xf32>
    %cst_14 = arith.constant 0.707106769 : f32
    %12 = vector.broadcast %cst_14 : f32 to vector<8x128xf32>
    %13 = arith.mulf %9, %12 : vector<8x128xf32>
    %14 = math.erf %13 : vector<8x128xf32>
    %cst_15 = arith.constant 1.000000e+00 : f32
    %15 = vector.broadcast %cst_15 : f32 to vector<8x128xf32>
    %16 = arith.addf %15, %14 : vector<8x128xf32>
    %17 = arith.mulf %11, %16 : vector<8x128xf32>
    %cst_16 = arith.constant dense<0.000000e+00> : vector<8x128xf32>
    %18 = tpu.matmul %17, %1, %cst_16 {dimension_numbers = #tpu.dot_dimension_numbers<[1], [0], [0], [1], [0, 0, 1, 1], [], []>} : vector<8x128xf32>, vector<128x128xf32>, vector<8x128xf32> -> vector<8x128xf32>
    %19 = vector.broadcast %4 : vector<1x128xf32> to vector<8x128xf32>
    %20 = arith.addf %18, %19 : vector<8x128xf32>
    %cst_17 = arith.constant 5.000000e-01 : f32
    %21 = vector.broadcast %cst_17 : f32 to vector<8x128xf32>
    %22 = arith.mulf %21, %20 : vector<8x128xf32>
    %cst_18 = arith.constant 0.707106769 : f32
    %23 = vector.broadcast %cst_18 : f32 to vector<8x128xf32>
    %24 = arith.mulf %20, %23 : vector<8x128xf32>
    %25 = math.erf %24 : vector<8x128xf32>
    %cst_19 = arith.constant 1.000000e+00 : f32
    %26 = vector.broadcast %cst_19 : f32 to vector<8x128xf32>
    %27 = arith.addf %26, %25 : vector<8x128xf32>
    %28 = arith.mulf %22, %27 : vector<8x128xf32>
    %cst_20 = arith.constant dense<0.000000e+00> : vector<8x128xf32>
    %29 = tpu.matmul %28, %2, %cst_20 {dimension_numbers = #tpu.dot_dimension_numbers<[1], [0], [0], [1], [0, 0, 1, 1], [], []>} : vector<8x128xf32>, vector<128x128xf32>, vector<8x128xf32> -> vector<8x128xf32>
    %30 = vector.broadcast %5 : vector<1x128xf32> to vector<8x128xf32>
    %31 = arith.addf %29, %30 : vector<8x128xf32>
    %c0_21 = arith.constant 0 : index
    %c0_22 = arith.constant 0 : index
    %32 = vector.load %arg8[%c0_21, %c0_22] : memref<8x128xf32, #tpu.memory_space<vmem>>, vector<8x128xf32>
    tpu.vector_store %arg8[%c0_21, %c0_22], %31 {strides = array<i32>} : memref<8x128xf32, #tpu.memory_space<vmem>>, vector<8x128xf32>,
    return
  }
  func.func @transform_0(%arg0: i32) -> (i32, i32) {
    %c0_i32 = arith.constant 0 : i32
    %c0_i32_0 = arith.constant 0 : i32
    return %arg0, %c0_i32 : i32, i32
  }
  func.func @transform_1(%arg0: i32) -> (i32, i32) {
    %c0_i32 = arith.constant 0 : i32
    %c0_i32_0 = arith.constant 0 : i32
    %c0_i32_1 = arith.constant 0 : i32
    return %c0_i32, %c0_i32_0 : i32, i32
  }
  func.func @transform_2(%arg0: i32) -> (i32, i32) {
    %c0_i32 = arith.constant 0 : i32
    %c0_i32_0 = arith.constant 0 : i32
    %c0_i32_1 = arith.constant 0 : i32
    return %c0_i32, %c0_i32_0 : i32, i32
  }
  func.func @transform_3(%arg0: i32) -> (i32, i32) {
    %c0_i32 = arith.constant 0 : i32
    %c0_i32_0 = arith.constant 0 : i32
    %c0_i32_1 = arith.constant 0 : i32
    return %c0_i32, %c0_i32_0 : i32, i32
  }
  func.func @transform_4(%arg0: i32) -> (i32, i32) {
    %c0_i32 = arith.constant 0 : i32
    %c0_i32_0 = arith.constant 0 : i32
    %c0_i32_1 = arith.constant 0 : i32
    return %c0_i32, %c0_i32_0 : i32, i32
  }
  func.func @transform_5(%arg0: i32) -> (i32, i32) {
    %c0_i32 = arith.constant 0 : i32
    %c0_i32_0 = arith.constant 0 : i32
    %c0_i32_1 = arith.constant 0 : i32
    return %c0_i32, %c0_i32_0 : i32, i32
  }
  func.func @transform_6(%arg0: i32) -> (i32, i32) {
    %c0_i32 = arith.constant 0 : i32
    %c0_i32_0 = arith.constant 0 : i32
    %c0_i32_1 = arith.constant 0 : i32
    return %c0_i32, %c0_i32_0 : i32, i32
  }
  func.func @transform_7(%arg0: i32) -> (i32, i32) {
    %c0_i32 = arith.constant 0 : i32
    %c0_i32_0 = arith.constant 0 : i32
    return %arg0, %c0_i32 : i32, i32
  }
}

</mosaic_0001>

<bundles_post_ra>
// kernel: _mlp_forward_impl.1
= control target key start
LH: loop header
LB: loop body
LE: loop exit
PB: predicated region body
PF: predicated region fallthrough
CT: control target
= control target key end

     0   :  { %12 = vsyncpa [#allocation3], 0  ;;  %s723_s0 = inlined_call_operand.vmem [shape: f32[8,128], index: 0, kind: input, shape index: {}]   ;;  %s724_s1 = inlined_call_operand.hbm [shape: f32[128,128], index: 1, kind: input, shape index: {}]   ;;  %s725_s2 = inlined_call_operand.vmem [shape: f32[1,128], index: 2, kind: input, shape index: {}]   ;;  %s726_s3 = inlined_call_operand.hbm [shape: f32[128,128], index: 3, kind: input, shape index: {}]   ;;  %s727_s4 = inlined_call_operand.vmem [shape: f32[1,128], index: 4, kind: input, shape index: {}]   ;;  %s728_s5 = inlined_call_operand.hbm [shape: f32[128,128], index: 5, kind: input, shape index: {}]   ;;  %s729_s6 = inlined_call_operand.vmem [shape: f32[1,128], index: 6, kind: input, shape index: {}]   ;;  %s730_s7 = inlined_call_operand.vmem [shape: f32[8,128], index: 7, kind: output, shape index: {}]  }
   0x1   :  { %13 = vsyncpa [#allocation5], 0  ;;  %s598_s24 = smov [#allocation4]   ;;  %s599_s26 = smov [#allocation2]  }
   0x2   :  { %s35_s25 = sshll.u32 %s598_s24, 4  ;;  %s21_s27 = sshll.u32 %s599_s26, 4  ;;  %s36_s25 = int_to_ptr.vmem [resolvable:$true] %s35_s25  ;;  %s22_s27 = int_to_ptr.vmem [resolvable:$true] %s21_s27 }
   0x3   :  { %s542_s28 = scalar_lea.vmem %s36_s25, 2048  ;;  %p547_p1 = scmp.lt.s32.totalorder %s36_s25, %s36_s25 }
   0x4   :  { %p543_p0 = scmp.ne.s32.totalorder %s36_s25, %s542_s28  ;;  %p548_p2 = scmp.lt.s32.totalorder %s542_s28, %s542_s28 }
   0x6   :  { %p549_p3 = por %p548_p2, %p547_p1 }
   0x8   :  { %p550_p4 = pnand %p549_p3, %p543_p0 }
   0xa   :  { %553 = shalt.err (!%p550_p4)
}
   0xb   :  { %s600_s29 = smov 128   ;;  %s601_s30 = smov 8  }
   0xc   :  { %41 = dma.hbm_to_vmem [thread:$0]  %s726_s3, 2048, %s36_s25, [#allocation5], %s600_s29, %s600_s29, %s601_s30  }
   0xd   :  { %s562_s10 = scalar_lea.vmem %s22_s27, 2048  ;;  %p567_p6 = scmp.lt.s32.totalorder %s22_s27, %s22_s27 }
   0xe   :  { %p563_p5 = scmp.ne.s32.totalorder %s22_s27, %s562_s10  ;;  %p568_p7 = scmp.lt.s32.totalorder %s562_s10, %s562_s10 }
  0x10   :  { %p569_p8 = por %p568_p7, %p567_p6 }
  0x12   :  { %p570_p9 = pnand %p569_p8, %p563_p5 }
  0x14   :  { %573 = shalt.err (!%p570_p9)
}
  0x15   :  { %27 = dma.hbm_to_vmem [thread:$0]  %s724_s1, 2048, %s22_s27, [#allocation3], %s600_s29, %s600_s29, %s601_s30  }
  0x16   :  { %s602_s13 = smov [#allocation6]  }
  0x17   :  { %s49_s14 = sshll.u32 %s602_s13, 4  ;;  %s50_s14 = int_to_ptr.vmem [resolvable:$true] %s49_s14 }
  0x18   :  { %s582_s15 = scalar_lea.vmem %s50_s14, 2048  ;;  %p587_p11 = scmp.lt.s32.totalorder %s50_s14, %s50_s14 }
  0x19   :  { %p583_p10 = scmp.ne.s32.totalorder %s50_s14, %s582_s15  ;;  %p588_p12 = scmp.lt.s32.totalorder %s582_s15, %s582_s15 }
  0x1b   :  { %p589_p13 = por %p588_p12, %p587_p11 }
  0x1d   :  { %p590_p0 = pnand %p589_p13, %p583_p10 }
  0x1f   :  { %593 = shalt.err (!%p590_p0)
}
  0x20   :  { %55 = dma.hbm_to_vmem [thread:$0]  %s728_s5, 2048, %s50_s14, [#allocation5], %s600_s29, %s600_s29, %s601_s30  }
  0x21   :  { %594 = dma.done.wait [#allocation3], 2048  }
  0x22   :  { %595 = vsyncadd [#allocation3], 4294965248 }
  0x23   :  { %596 = dma.done.wait [#allocation5], 4096  }
  0x24   :  { %597 = vsyncadd [#allocation5], 4294963200  ;;  %v603_v0 = vmov 0.0   ;;  %vm604_vm0 = vmmov 0   ;;  %v82_v1 = vld [vmem:[#allocation2 + $0x78] sm:$0xff]  ;;  %v81_v2 = vld [vmem:[#allocation2 + $0x70] sm:$0xff] }
  0x25   :  { %418 = vmatprep.subr.mxu0 %v603_v0  ;;  %450 = vmatprep.mubr.msk.f32.mxu0 %vm604_vm0, %v603_v0  ;;  %v80_v3 = vld [vmem:[#allocation2 + $0x68] sm:$0xff]  ;;  %v79_v4 = vld [vmem:[#allocation2 + $0x60] sm:$0xff]  ;;  %v98_v5 = vld [vmem:[#allocation4 + $0x78] sm:$0xff] }
  0x26   :  { %453 = vmatprep.subr.mxu1 %v603_v0  ;;  %485 = vmatprep.mubr.msk.f32.mxu1 %vm604_vm0, %v603_v0  ;;  %v78_v6 = vld [vmem:[#allocation2 + $0x58] sm:$0xff]  ;;  %v97_v7 = vld [vmem:[#allocation4 + $0x70] sm:$0xff]  ;;  %v96_v8 = vld [vmem:[#allocation4 + $0x68] sm:$0xff] }
  0x27   :  { %419 = vmatpush3.msra.mxu0 %v82_v1  ;;  %454 = vmatpush3.msra.mxu1 %v98_v5  ;;  %v77_v9 = vld [vmem:[#allocation2 + $0x50] sm:$0xff]  ;;  %v95_v10 = vld [vmem:[#allocation4 + $0x60] sm:$0xff]  ;;  %v76_v11 = vld [vmem:[#allocation2 + $0x48] sm:$0xff] }
  0x28   :  { %420 = vmatprep.subr.mxu0 %v603_v0  ;;  %455 = vmatprep.subr.mxu1 %v603_v0  ;;  %v75_v12 = vld [vmem:[#allocation2 + $0x40] sm:$0xff]  ;;  %v74_v13 = vld [vmem:[#allocation2 + $0x38] sm:$0xff]  ;;  %v73_v14 = vld [vmem:[#allocation2 + $0x30] sm:$0xff] }
  0x29   :  { %421 = vmatpush3.msra.mxu0 %v81_v2  ;;  %456 = vmatpush3.msra.mxu1 %v97_v7  ;;  %v72_v15 = vld [vmem:[#allocation2 + $0x28] sm:$0xff]  ;;  %v71_v16 = vld [vmem:[#allocation2 + $0x20] sm:$0xff]  ;;  %v70_v17 = vld [vmem:[#allocation2 + $0x18] sm:$0xff] }
  0x2a   :  { %422 = vmatprep.subr.mxu0 %v603_v0  ;;  %457 = vmatprep.subr.mxu1 %v603_v0  ;;  %v69_v18 = vld [vmem:[#allocation2 + $0x10] sm:$0xff]  ;;  %v68_v19 = vld [vmem:[#allocation2 + $0x8] sm:$0xff]  ;;  %v67_v20 = vld [vmem:[#allocation2] sm:$0xff] }
  0x2b   :  { %423 = vmatpush3.msra.mxu0 %v80_v3  ;;  %458 = vmatpush3.msra.mxu1 %v96_v8  ;;  %v118_v21 = vld [vmem:[%s723_s0] sm:$0xff]  ;;  %v94_v22 = vld [vmem:[#allocation4 + $0x58] sm:$0xff]  ;;  %v93_v23 = vld [vmem:[#allocation4 + $0x50] sm:$0xff] }
  0x2c   :  { %424 = vmatprep.subr.mxu0 %v603_v0  ;;  %459 = vmatprep.subr.mxu1 %v603_v0  ;;  %v92_v24 = vld [vmem:[#allocation4 + $0x48] sm:$0xff]  ;;  %v91_v25 = vld [vmem:[#allocation4 + $0x40] sm:$0xff]  ;;  %v90_v26 = vld [vmem:[#allocation4 + $0x38] sm:$0xff] }
  0x2d   :  { %425 = vmatpush3.msra.mxu0 %v79_v4  ;;  %460 = vmatpush3.msra.mxu1 %v95_v10  ;;  %v89_v27 = vld [vmem:[#allocation4 + $0x30] sm:$0xff]  ;;  %v88_v28 = vld [vmem:[#allocation4 + $0x28] sm:$0xff]  ;;  %v87_v29 = vld [vmem:[#allocation4 + $0x20] sm:$0xff] }
  0x2e   :  { %426 = vmatprep.subr.mxu0 %v603_v0  ;;  %461 = vmatprep.subr.mxu1 %v603_v0  ;;  %v86_v30 = vld [vmem:[#allocation4 + $0x18] sm:$0xff]  ;;  %v85_v31 = vld [vmem:[#allocation4 + $0x10] sm:$0xff]  ;;  %v84_v32 = vld [vmem:[#allocation4 + $0x8] sm:$0xff] }
  0x2f   :  { %427 = vmatpush3.msra.mxu0 %v78_v6  ;;  %462 = vmatpush3.msra.mxu1 %v94_v22  ;;  %v83_v33 = vld [vmem:[#allocation4] sm:$0xff]  ;;  %v114_v34 = vld [vmem:[#allocation6 + $0x78] sm:$0xff]  ;;  %v113_v35 = vld [vmem:[#allocation6 + $0x70] sm:$0xff] }
  0x30   :  { %428 = vmatprep.subr.mxu0 %v603_v0  ;;  %463 = vmatprep.subr.mxu1 %v603_v0  ;;  %v112_v36 = vld [vmem:[#allocation6 + $0x68] sm:$0xff]  ;;  %v111_v37 = vld [vmem:[#allocation6 + $0x60] sm:$0xff]  ;;  %v110_v47 = vld [vmem:[#allocation6 + $0x58] sm:$0xff] }
  0x31   :  { %429 = vmatpush3.msra.mxu0 %v77_v9  ;;  %464 = vmatpush3.msra.mxu1 %v93_v23  ;;  %v364_v38 = vld [vmem:[%s725_s2] ss:$0 sm:$0xff]  ;;  %v109_v48 = vld [vmem:[#allocation6 + $0x50] sm:$0xff]  ;;  %v108_v49 = vld [vmem:[#allocation6 + $0x48] sm:$0xff] }
  0x32   :  { %430 = vmatprep.subr.mxu0 %v603_v0  ;;  %465 = vmatprep.subr.mxu1 %v603_v0  ;;  %v107_v50 = vld [vmem:[#allocation6 + $0x40] sm:$0xff]  ;;  %v106_v51 = vld [vmem:[#allocation6 + $0x38] sm:$0xff]  ;;  %v105_v52 = vld [vmem:[#allocation6 + $0x30] sm:$0xff] }
  0x33   :  { %431 = vmatpush3.msra.mxu0 %v76_v11  ;;  %466 = vmatpush3.msra.mxu1 %v92_v24  ;;  %v104_v53 = vld [vmem:[#allocation6 + $0x28] sm:$0xff]  ;;  %v103_v54 = vld [vmem:[#allocation6 + $0x20] sm:$0xff]  ;;  %v102_v55 = vld [vmem:[#allocation6 + $0x18] sm:$0xff] }
  0x34   :  { %432 = vmatprep.subr.mxu0 %v603_v0  ;;  %467 = vmatprep.subr.mxu1 %v603_v0  ;;  %v101_v56 = vld [vmem:[#allocation6 + $0x10] sm:$0xff]  ;;  %v100_v57 = vld [vmem:[#allocation6 + $0x8] sm:$0xff]  ;;  %v99_v58 = vld [vmem:[#allocation6] sm:$0xff] }
  0x35   :  { %433 = vmatpush3.msra.mxu0 %v75_v12  ;;  %468 = vmatpush3.msra.mxu1 %v91_v25  ;;  %v365_v59 = vld [vmem:[%s727_s4] ss:$0 sm:$0xff] }
  0x36   :  { %434 = vmatprep.subr.mxu0 %v603_v0  ;;  %469 = vmatprep.subr.mxu1 %v603_v0 }
  0x37   :  { %435 = vmatpush3.msra.mxu0 %v74_v13  ;;  %470 = vmatpush3.msra.mxu1 %v90_v26 }
  0x38   :  { %436 = vmatprep.subr.mxu0 %v603_v0  ;;  %471 = vmatprep.subr.mxu1 %v603_v0 }
  0x39   :  { %437 = vmatpush3.msra.mxu0 %v73_v14  ;;  %472 = vmatpush3.msra.mxu1 %v89_v27 }
  0x3a   :  { %438 = vmatprep.subr.mxu0 %v603_v0  ;;  %473 = vmatprep.subr.mxu1 %v603_v0 }
  0x3b   :  { %439 = vmatpush3.msra.mxu0 %v72_v15  ;;  %474 = vmatpush3.msra.mxu1 %v88_v28 }
  0x3c   :  { %440 = vmatprep.subr.mxu0 %v603_v0  ;;  %475 = vmatprep.subr.mxu1 %v603_v0 }
  0x3d   :  { %441 = vmatpush3.msra.mxu0 %v71_v16  ;;  %476 = vmatpush3.msra.mxu1 %v87_v29 }
  0x3e   :  { %442 = vmatprep.subr.mxu0 %v603_v0  ;;  %477 = vmatprep.subr.mxu1 %v603_v0 }
  0x3f   :  { %443 = vmatpush3.msra.mxu0 %v70_v17  ;;  %478 = vmatpush3.msra.mxu1 %v86_v30 }
  0x40   :  { %444 = vmatprep.subr.mxu0 %v603_v0  ;;  %479 = vmatprep.subr.mxu1 %v603_v0 }
  0x41   :  { %445 = vmatpush3.msra.mxu0 %v69_v18  ;;  %480 = vmatpush3.msra.mxu1 %v85_v31 }
  0x42   :  { %446 = vmatprep.subr.mxu0 %v603_v0  ;;  %481 = vmatprep.subr.mxu1 %v603_v0 }
  0x43   :  { %447 = vmatpush3.msra.mxu0 %v68_v19  ;;  %482 = vmatpush3.msra.mxu1 %v84_v32 }
  0x44   :  { %448 = vmatprep.subr.mxu0 %v603_v0  ;;  %483 = vmatprep.subr.mxu1 %v603_v0 }
  0x45   :  { %449 = vmatpush3.msra.mxu0 %v67_v20  ;;  %484 = vmatpush3.msra.mxu1 %v83_v33 }
  0x46   :  { %451 = vmatmul.mubr.f32.vlgmr.msra.gmra.mxu0 %v118_v21  ;;  %488 = vmatprep.subr.mxu0 %v603_v0 }
  0x47   :  { %520 = vmatprep.mubr.msk.f32.mxu0 %vm604_vm0, %v603_v0  ;;  %489 = vmatpush3.msra.mxu0 %v114_v34 }
  0x48   :  { %490 = vmatprep.subr.mxu0 %v603_v0 }
  0x49   :  { %491 = vmatpush3.msra.mxu0 %v113_v35 }
  0x4a   :  { %492 = vmatprep.subr.mxu0 %v603_v0 }
  0x4b   :  { %493 = vmatpush3.msra.mxu0 %v112_v36 }
  0x4c   :  { %494 = vmatprep.subr.mxu0 %v603_v0 }
  0x4d   :  { %495 = vmatpush3.msra.mxu0 %v111_v37 }
  0x4e   :  { %496 = vmatprep.subr.mxu0 %v603_v0 }
  0x4f   :  { %497 = vmatpush3.msra.mxu0 %v110_v47 }
  0x50   :  { %498 = vmatprep.subr.mxu0 %v603_v0 }
  0x51   :  { %499 = vmatpush3.msra.mxu0 %v109_v48 }
  0x52   :  { %500 = vmatprep.subr.mxu0 %v603_v0 }
  0x53   :  { %501 = vmatpush3.msra.mxu0 %v108_v49 }
  0x54   :  { %502 = vmatprep.subr.mxu0 %v603_v0 }
  0x55   :  { %503 = vmatpush3.msra.mxu0 %v107_v50 }
  0x56   :  { %504 = vmatprep.subr.mxu0 %v603_v0 }
  0x57   :  { %505 = vmatpush3.msra.mxu0 %v106_v51 }
  0x58   :  { %506 = vmatprep.subr.mxu0 %v603_v0 }
  0x59   :  { %507 = vmatpush3.msra.mxu0 %v105_v52 }
  0x5a   :  { %508 = vmatprep.subr.mxu0 %v603_v0 }
  0x5b   :  { %509 = vmatpush3.msra.mxu0 %v104_v53 }
  0x5c   :  { %510 = vmatprep.subr.mxu0 %v603_v0 }
  0x5d   :  { %511 = vmatpush3.msra.mxu0 %v103_v54 }
  0x5e   :  { %512 = vmatprep.subr.mxu0 %v603_v0 }
  0x5f   :  { %513 = vmatpush3.msra.mxu0 %v102_v55 }
  0x60   :  { %514 = vmatprep.subr.mxu0 %v603_v0 }
  0x61   :  { %515 = vmatpush3.msra.mxu0 %v101_v56 }
  0x62   :  { %516 = vmatprep.subr.mxu0 %v603_v0 }
  0x63   :  { %517 = vmatpush3.msra.mxu0 %v100_v57 }
  0x64   :  { %518 = vmatprep.subr.mxu0 %v603_v0  ;;  %v366_v0 = vld [vmem:[%s729_s6] ss:$0 sm:$0xff] }
  0x65   :  { %519 = vmatpush3.msra.mxu0 %v99_v58 }
 0x106   :  { %v191_v39 = vpop.f32.mrf.mxu0 }
 0x107   :  { %v192_v40 = vadd.f32 %v364_v38, %v191_v39 }
 0x108   :  { %v452_v41 = vpop.f32.mrf.mxu0 }
 0x109   :  { %v196_v42 = vmul.f32 0.70710677, %v192_v40  ;;  %v195_v44 = vmul.f32 0.5, %v192_v40 }
 0x10b   :  { %530 = verf.f32 %v196_v42 }
 0x118   :  { %v531_v43 = vpop.eup %530 }
 0x119   :  { %v198_v45 = vadd.f32 1.0, %v531_v43 }
 0x11b   :  { %v199_v46 = vmul.f32 %v198_v45, %v195_v44 }
 0x11d   :  { %486 = vmatmul.mubr.f32.vlgmr.msra.gmra.mxu1 %v199_v46 }
 0x1dd   :  { %v272_v60 = vpop.f32.mrf.mxu1 }
 0x1de   :  { %v273_v61 = vadd.f32 %v365_v59, %v272_v60 }
 0x1df   :  { %v487_v62 = vpop.f32.mrf.mxu1 }
 0x1e0   :  { %v277_v63 = vmul.f32 0.70710677, %v273_v61  ;;  %v276_v2 = vmul.f32 0.5, %v273_v61 }
 0x1e2   :  { %532 = verf.f32 %v277_v63 }
 0x1ef   :  { %v533_v1 = vpop.eup %532 }
 0x1f0   :  { %v279_v3 = vadd.f32 1.0, %v533_v1 }
 0x1f2   :  { %v280_v4 = vmul.f32 %v279_v3, %v276_v2 }
 0x1f4   :  { %521 = vmatmul.mubr.f32.vlgmr.msra.gmra.mxu0 %v280_v4 }
 0x2b4   :  { %v353_v5 = vpop.f32.mrf.mxu0 }
 0x2b5   :  { %v354_v6 = vadd.f32 %v366_v0, %v353_v5 }
 0x2b6   :  { %v522_v7 = vpop.f32.mrf.mxu0 }
 0x2b7   :  { %357 = vst [vmem:[%s730_s7] sm:$0xff] %v354_v6 }
 0x2b8   :  { %362 = vsyncpa [#allocation3], 1 }
 0x2b9   :  { %363 = vsyncpa [#allocation5], 1 }

// kernel: _mlp_forward_impl.1
= control target key start
LH: loop header
LB: loop body
LE: loop exit
PB: predicated region body
PF: predicated region fallthrough
CT: control target
= control target key end

     0   :  { %12 = vsyncpa [#allocation3], 0  ;;  %s723_s0 = inlined_call_operand.vmem [shape: f32[8,128], index: 0, kind: input, shape index: {}]   ;;  %s724_s1 = inlined_call_operand.hbm [shape: f32[128,128], index: 1, kind: input, shape index: {}]   ;;  %s725_s2 = inlined_call_operand.vmem [shape: f32[1,128], index: 2, kind: input, shape index: {}]   ;;  %s726_s3 = inlined_call_operand.hbm [shape: f32[128,128], index: 3, kind: input, shape index: {}]   ;;  %s727_s4 = inlined_call_operand.vmem [shape: f32[1,128], index: 4, kind: input, shape index: {}]   ;;  %s728_s5 = inlined_call_operand.hbm [shape: f32[128,128], index: 5, kind: input, shape index: {}]   ;;  %s729_s6 = inlined_call_operand.vmem [shape: f32[1,128], index: 6, kind: input, shape index: {}]   ;;  %s730_s7 = inlined_call_operand.vmem [shape: f32[8,128], index: 7, kind: output, shape index: {}]  }
   0x1   :  { %13 = vsyncpa [#allocation5], 0  ;;  %s598_s24 = smov [#allocation4]   ;;  %s599_s26 = smov [#allocation2]  }
   0x2   :  { %s35_s25 = sshll.u32 %s598_s24, 4  ;;  %s21_s27 = sshll.u32 %s599_s26, 4  ;;  %s36_s25 = int_to_ptr.vmem [resolvable:$true] %s35_s25  ;;  %s22_s27 = int_to_ptr.vmem [resolvable:$true] %s21_s27 }
   0x3   :  { %s542_s28 = scalar_lea.vmem %s36_s25, 2048  ;;  %p547_p1 = scmp.lt.s32.totalorder %s36_s25, %s36_s25 }
   0x4   :  { %p543_p0 = scmp.ne.s32.totalorder %s36_s25, %s542_s28  ;;  %p548_p2 = scmp.lt.s32.totalorder %s542_s28, %s542_s28 }
   0x6   :  { %p549_p3 = por %p548_p2, %p547_p1 }
   0x8   :  { %p550_p4 = pnand %p549_p3, %p543_p0 }
   0xa   :  { %553 = shalt.err (!%p550_p4)
}
   0xb   :  { %s600_s29 = smov 128   ;;  %s601_s30 = smov 8  }
   0xc   :  { %41 = dma.hbm_to_vmem [thread:$0]  %s726_s3, 2048, %s36_s25, [#allocation5], %s600_s29, %s600_s29, %s601_s30  }
   0xd   :  { %s562_s10 = scalar_lea.vmem %s22_s27, 2048  ;;  %p567_p6 = scmp.lt.s32.totalorder %s22_s27, %s22_s27 }
   0xe   :  { %p563_p5 = scmp.ne.s32.totalorder %s22_s27, %s562_s10  ;;  %p568_p7 = scmp.lt.s32.totalorder %s562_s10, %s562_s10 }
  0x10   :  { %p569_p8 = por %p568_p7, %p567_p6 }
  0x12   :  { %p570_p9 = pnand %p569_p8, %p563_p5 }
  0x14   :  { %573 = shalt.err (!%p570_p9)
}
  0x15   :  { %27 = dma.hbm_to_vmem [thread:$0]  %s724_s1, 2048, %s22_s27, [#allocation3], %s600_s29, %s600_s29, %s601_s30  }
  0x16   :  { %s602_s13 = smov [#allocation6]  }
  0x17   :  { %s49_s14 = sshll.u32 %s602_s13, 4  ;;  %s50_s14 = int_to_ptr.vmem [resolvable:$true] %s49_s14 }
  0x18   :  { %s582_s15 = scalar_lea.vmem %s50_s14, 2048  ;;  %p587_p11 = scmp.lt.s32.totalorder %s50_s14, %s50_s14 }
  0x19   :  { %p583_p10 = scmp.ne.s32.totalorder %s50_s14, %s582_s15  ;;  %p588_p12 = scmp.lt.s32.totalorder %s582_s15, %s582_s15 }
  0x1b   :  { %p589_p13 = por %p588_p12, %p587_p11 }
  0x1d   :  { %p590_p0 = pnand %p589_p13, %p583_p10 }
  0x1f   :  { %593 = shalt.err (!%p590_p0)
}
  0x20   :  { %55 = dma.hbm_to_vmem [thread:$0]  %s728_s5, 2048, %s50_s14, [#allocation5], %s600_s29, %s600_s29, %s601_s30  }
  0x21   :  { %594 = dma.done.wait [#allocation3], 2048  }
  0x22   :  { %595 = vsyncadd [#allocation3], 4294965248 }
  0x23   :  { %596 = dma.done.wait [#allocation5], 4096  }
  0x24   :  { %597 = vsyncadd [#allocation5], 4294963200  ;;  %v603_v0 = vmov 0.0   ;;  %vm604_vm0 = vmmov 0   ;;  %v82_v1 = vld [vmem:[#allocation2 + $0x78] sm:$0xff]  ;;  %v81_v2 = vld [vmem:[#allocation2 + $0x70] sm:$0xff] }
  0x25   :  { %418 = vmatprep.subr.mxu0 %v603_v0  ;;  %450 = vmatprep.mubr.msk.f32.mxu0 %vm604_vm0, %v603_v0  ;;  %v80_v3 = vld [vmem:[#allocation2 + $0x68] sm:$0xff]  ;;  %v79_v4 = vld [vmem:[#allocation2 + $0x60] sm:$0xff]  ;;  %v98_v5 = vld [vmem:[#allocation4 + $0x78] sm:$0xff] }
  0x26   :  { %453 = vmatprep.subr.mxu1 %v603_v0  ;;  %485 = vmatprep.mubr.msk.f32.mxu1 %vm604_vm0, %v603_v0  ;;  %v78_v6 = vld [vmem:[#allocation2 + $0x58] sm:$0xff]  ;;  %v97_v7 = vld [vmem:[#allocation4 + $0x70] sm:$0xff]  ;;  %v96_v8 = vld [vmem:[#allocation4 + $0x68] sm:$0xff] }
  0x27   :  { %419 = vmatpush3.msra.mxu0 %v82_v1  ;;  %454 = vmatpush3.msra.mxu1 %v98_v5  ;;  %v77_v9 = vld [vmem:[#allocation2 + $0x50] sm:$0xff]  ;;  %v95_v10 = vld [vmem:[#allocation4 + $0x60] sm:$0xff]  ;;  %v76_v11 = vld [vmem:[#allocation2 + $0x48] sm:$0xff] }
  0x28   :  { %420 = vmatprep.subr.mxu0 %v603_v0  ;;  %455 = vmatprep.subr.mxu1 %v603_v0  ;;  %v75_v12 = vld [vmem:[#allocation2 + $0x40] sm:$0xff]  ;;  %v74_v13 = vld [vmem:[#allocation2 + $0x38] sm:$0xff]  ;;  %v73_v14 = vld [vmem:[#allocation2 + $0x30] sm:$0xff] }
  0x29   :  { %421 = vmatpush3.msra.mxu0 %v81_v2  ;;  %456 = vmatpush3.msra.mxu1 %v97_v7  ;;  %v72_v15 = vld [vmem:[#allocation2 + $0x28] sm:$0xff]  ;;  %v71_v16 = vld [vmem:[#allocation2 + $0x20] sm:$0xff]  ;;  %v70_v17 = vld [vmem:[#allocation2 + $0x18] sm:$0xff] }
  0x2a   :  { %422 = vmatprep.subr.mxu0 %v603_v0  ;;  %457 = vmatprep.subr.mxu1 %v603_v0  ;;  %v69_v18 = vld [vmem:[#allocation2 + $0x10] sm:$0xff]  ;;  %v68_v19 = vld [vmem:[#allocation2 + $0x8] sm:$0xff]  ;;  %v67_v20 = vld [vmem:[#allocation2] sm:$0xff] }
  0x2b   :  { %423 = vmatpush3.msra.mxu0 %v80_v3  ;;  %458 = vmatpush3.msra.mxu1 %v96_v8  ;;  %v118_v21 = vld [vmem:[%s723_s0] sm:$0xff]  ;;  %v94_v22 = vld [vmem:[#allocation4 + $0x58] sm:$0xff]  ;;  %v93_v23 = vld [vmem:[#allocation4 + $0x50] sm:$0xff] }
  0x2c   :  { %424 = vmatprep.subr.mxu0 %v603_v0  ;;  %459 = vmatprep.subr.mxu1 %v603_v0  ;;  %v92_v24 = vld [vmem:[#allocation4 + $0x48] sm:$0xff]  ;;  %v91_v25 = vld [vmem:[#allocation4 + $0x40] sm:$0xff]  ;;  %v90_v26 = vld [vmem:[#allocation4 + $0x38] sm:$0xff] }
  0x2d   :  { %425 = vmatpush3.msra.mxu0 %v79_v4  ;;  %460 = vmatpush3.msra.mxu1 %v95_v10  ;;  %v89_v27 = vld [vmem:[#allocation4 + $0x30] sm:$0xff]  ;;  %v88_v28 = vld [vmem:[#allocation4 + $0x28] sm:$0xff]  ;;  %v87_v29 = vld [vmem:[#allocation4 + $0x20] sm:$0xff] }
  0x2e   :  { %426 = vmatprep.subr.mxu0 %v603_v0  ;;  %461 = vmatprep.subr.mxu1 %v603_v0  ;;  %v86_v30 = vld [vmem:[#allocation4 + $0x18] sm:$0xff]  ;;  %v85_v31 = vld [vmem:[#allocation4 + $0x10] sm:$0xff]  ;;  %v84_v32 = vld [vmem:[#allocation4 + $0x8] sm:$0xff] }
  0x2f   :  { %427 = vmatpush3.msra.mxu0 %v78_v6  ;;  %462 = vmatpush3.msra.mxu1 %v94_v22  ;;  %v83_v33 = vld [vmem:[#allocation4] sm:$0xff]  ;;  %v114_v34 = vld [vmem:[#allocation6 + $0x78] sm:$0xff]  ;;  %v113_v35 = vld [vmem:[#allocation6 + $0x70] sm:$0xff] }
  0x30   :  { %428 = vmatprep.subr.mxu0 %v603_v0  ;;  %463 = vmatprep.subr.mxu1 %v603_v0  ;;  %v112_v36 = vld [vmem:[#allocation6 + $0x68] sm:$0xff]  ;;  %v111_v37 = vld [vmem:[#allocation6 + $0x60] sm:$0xff]  ;;  %v110_v47 = vld [vmem:[#allocation6 + $0x58] sm:$0xff] }
  0x31   :  { %429 = vmatpush3.msra.mxu0 %v77_v9  ;;  %464 = vmatpush3.msra.mxu1 %v93_v23  ;;  %v364_v38 = vld [vmem:[%s725_s2] ss:$0 sm:$0xff]  ;;  %v109_v48 = vld [vmem:[#allocation6 + $0x50] sm:$0xff]  ;;  %v108_v49 = vld [vmem:[#allocation6 + $0x48] sm:$0xff] }
  0x32   :  { %430 = vmatprep.subr.mxu0 %v603_v0  ;;  %465 = vmatprep.subr.mxu1 %v603_v0  ;;  %v107_v50 = vld [vmem:[#allocation6 + $0x40] sm:$0xff]  ;;  %v106_v51 = vld [vmem:[#allocation6 + $0x38] sm:$0xff]  ;;  %v105_v52 = vld [vmem:[#allocation6 + $0x30] sm:$0xff] }
  0x33   :  { %431 = vmatpush3.msra.mxu0 %v76_v11  ;;  %466 = vmatpush3.msra.mxu1 %v92_v24  ;;  %v104_v53 = vld [vmem:[#allocation6 + $0x28] sm:$0xff]  ;;  %v103_v54 = vld [vmem:[#allocation6 + $0x20] sm:$0xff]  ;;  %v102_v55 = vld [vmem:[#allocation6 + $0x18] sm:$0xff] }
  0x34   :  { %432 = vmatprep.subr.mxu0 %v603_v0  ;;  %467 = vmatprep.subr.mxu1 %v603_v0  ;;  %v101_v56 = vld [vmem:[#allocation6 + $0x10] sm:$0xff]  ;;  %v100_v57 = vld [vmem:[#allocation6 + $0x8] sm:$0xff]  ;;  %v99_v58 = vld [vmem:[#allocation6] sm:$0xff] }
  0x35   :  { %433 = vmatpush3.msra.mxu0 %v75_v12  ;;  %468 = vmatpush3.msra.mxu1 %v91_v25  ;;  %v365_v59 = vld [vmem:[%s727_s4] ss:$0 sm:$0xff] }
  0x36   :  { %434 = vmatprep.subr.mxu0 %v603_v0  ;;  %469 = vmatprep.subr.mxu1 %v603_v0 }
  0x37   :  { %435 = vmatpush3.msra.mxu0 %v74_v13  ;;  %470 = vmatpush3.msra.mxu1 %v90_v26 }
  0x38   :  { %436 = vmatprep.subr.mxu0 %v603_v0  ;;  %471 = vmatprep.subr.mxu1 %v603_v0 }
  0x39   :  { %437 = vmatpush3.msra.mxu0 %v73_v14  ;;  %472 = vmatpush3.msra.mxu1 %v89_v27 }
  0x3a   :  { %438 = vmatprep.subr.mxu0 %v603_v0  ;;  %473 = vmatprep.subr.mxu1 %v603_v0 }
  0x3b   :  { %439 = vmatpush3.msra.mxu0 %v72_v15  ;;  %474 = vmatpush3.msra.mxu1 %v88_v28 }
  0x3c   :  { %440 = vmatprep.subr.mxu0 %v603_v0  ;;  %475 = vmatprep.subr.mxu1 %v603_v0 }
  0x3d   :  { %441 = vmatpush3.msra.mxu0 %v71_v16  ;;  %476 = vmatpush3.msra.mxu1 %v87_v29 }
  0x3e   :  { %442 = vmatprep.subr.mxu0 %v603_v0  ;;  %477 = vmatprep.subr.mxu1 %v603_v0 }
  0x3f   :  { %443 = vmatpush3.msra.mxu0 %v70_v17  ;;  %478 = vmatpush3.msra.mxu1 %v86_v30 }
  0x40   :  { %444 = vmatprep.subr.mxu0 %v603_v0  ;;  %479 = vmatprep.subr.mxu1 %v603_v0 }
  0x41   :  { %445 = vmatpush3.msra.mxu0 %v69_v18  ;;  %480 = vmatpush3.msra.mxu1 %v85_v31 }
  0x42   :  { %446 = vmatprep.subr.mxu0 %v603_v0  ;;  %481 = vmatprep.subr.mxu1 %v603_v0 }
  0x43   :  { %447 = vmatpush3.msra.mxu0 %v68_v19  ;;  %482 = vmatpush3.msra.mxu1 %v84_v32 }
  0x44   :  { %448 = vmatprep.subr.mxu0 %v603_v0  ;;  %483 = vmatprep.subr.mxu1 %v603_v0 }
  0x45   :  { %449 = vmatpush3.msra.mxu0 %v67_v20  ;;  %484 = vmatpush3.msra.mxu1 %v83_v33 }
  0x46   :  { %451 = vmatmul.mubr.f32.vlgmr.msra.gmra.mxu0 %v118_v21  ;;  %488 = vmatprep.subr.mxu0 %v603_v0 }
  0x47   :  { %520 = vmatprep.mubr.msk.f32.mxu0 %vm604_vm0, %v603_v0  ;;  %489 = vmatpush3.msra.mxu0 %v114_v34 }
  0x48   :  { %490 = vmatprep.subr.mxu0 %v603_v0 }
  0x49   :  { %491 = vmatpush3.msra.mxu0 %v113_v35 }
  0x4a   :  { %492 = vmatprep.subr.mxu0 %v603_v0 }
  0x4b   :  { %493 = vmatpush3.msra.mxu0 %v112_v36 }
  0x4c   :  { %494 = vmatprep.subr.mxu0 %v603_v0 }
  0x4d   :  { %495 = vmatpush3.msra.mxu0 %v111_v37 }
  0x4e   :  { %496 = vmatprep.subr.mxu0 %v603_v0 }
  0x4f   :  { %497 = vmatpush3.msra.mxu0 %v110_v47 }
  0x50   :  { %498 = vmatprep.subr.mxu0 %v603_v0 }
  0x51   :  { %499 = vmatpush3.msra.mxu0 %v109_v48 }
  0x52   :  { %500 = vmatprep.subr.mxu0 %v603_v0 }
  0x53   :  { %501 = vmatpush3.msra.mxu0 %v108_v49 }
  0x54   :  { %502 = vmatprep.subr.mxu0 %v603_v0 }
  0x55   :  { %503 = vmatpush3.msra.mxu0 %v107_v50 }
  0x56   :  { %504 = vmatprep.subr.mxu0 %v603_v0 }
  0x57   :  { %505 = vmatpush3.msra.mxu0 %v106_v51 }
  0x58   :  { %506 = vmatprep.subr.mxu0 %v603_v0 }
  0x59   :  { %507 = vmatpush3.msra.mxu0 %v105_v52 }
  0x5a   :  { %508 = vmatprep.subr.mxu0 %v603_v0 }
  0x5b   :  { %509 = vmatpush3.msra.mxu0 %v104_v53 }
  0x5c   :  { %510 = vmatprep.subr.mxu0 %v603_v0 }
  0x5d   :  { %511 = vmatpush3.msra.mxu0 %v103_v54 }
  0x5e   :  { %512 = vmatprep.subr.mxu0 %v603_v0 }
  0x5f   :  { %513 = vmatpush3.msra.mxu0 %v102_v55 }
  0x60   :  { %514 = vmatprep.subr.mxu0 %v603_v0 }
  0x61   :  { %515 = vmatpush3.msra.mxu0 %v101_v56 }
  0x62   :  { %516 = vmatprep.subr.mxu0 %v603_v0 }
  0x63   :  { %517 = vmatpush3.msra.mxu0 %v100_v57 }
  0x64   :  { %518 = vmatprep.subr.mxu0 %v603_v0  ;;  %v366_v0 = vld [vmem:[%s729_s6] ss:$0 sm:$0xff] }
  0x65   :  { %519 = vmatpush3.msra.mxu0 %v99_v58 }
 0x106   :  { %v191_v39 = vpop.f32.mrf.mxu0 }
 0x107   :  { %v192_v40 = vadd.f32 %v364_v38, %v191_v39 }
 0x108   :  { %v452_v41 = vpop.f32.mrf.mxu0 }
 0x109   :  { %v196_v42 = vmul.f32 0.70710677, %v192_v40  ;;  %v195_v44 = vmul.f32 0.5, %v192_v40 }
 0x10b   :  { %530 = verf.f32 %v196_v42 }
 0x118   :  { %v531_v43 = vpop.eup %530 }
 0x119   :  { %v198_v45 = vadd.f32 1.0, %v531_v43 }
 0x11b   :  { %v199_v46 = vmul.f32 %v198_v45, %v195_v44 }
 0x11d   :  { %486 = vmatmul.mubr.f32.vlgmr.msra.gmra.mxu1 %v199_v46 }
 0x1dd   :  { %v272_v60 = vpop.f32.mrf.mxu1 }
 0x1de   :  { %v273_v61 = vadd.f32 %v365_v59, %v272_v60 }
 0x1df   :  { %v487_v62 = vpop.f32.mrf.mxu1 }
 0x1e0   :  { %v277_v63 = vmul.f32 0.70710677, %v273_v61  ;;  %v276_v2 = vmul.f32 0.5, %v273_v61 }
 0x1e2   :  { %532 = verf.f32 %v277_v63 }
 0x1ef   :  { %v533_v1 = vpop.eup %532 }
 0x1f0   :  { %v279_v3 = vadd.f32 1.0, %v533_v1 }
 0x1f2   :  { %v280_v4 = vmul.f32 %v279_v3, %v276_v2 }
 0x1f4   :  { %521 = vmatmul.mubr.f32.vlgmr.msra.gmra.mxu0 %v280_v4 }
 0x2b4   :  { %v353_v5 = vpop.f32.mrf.mxu0 }
 0x2b5   :  { %v354_v6 = vadd.f32 %v366_v0, %v353_v5 }
 0x2b6   :  { %v522_v7 = vpop.f32.mrf.mxu0 }
 0x2b7   :  { %357 = vst [vmem:[%s730_s7] sm:$0xff] %v354_v6 }
 0x2b8   :  { %362 = vsyncpa [#allocation3], 1 }
 0x2b9   :  { %363 = vsyncpa [#allocation5], 1 }

</bundles_post_ra>
